<compile_context>
chip_gen: v7x
topology: tpu7x:2x2x1
jax: 0.10.0
libtpu: 0.0.40
codegen_flags: <defaults>
</compile_context>

<pallas_src>
import functools

import jax
import jax.numpy as jnp
from jax.experimental import pallas as pl
from jax.experimental.pallas import tpu as pltpu

F32 = jnp.float32
BF16 = jnp.bfloat16
LANES = 128


# ------------------------------- Pallas kernel -------------------------------

def _residual_chain_kernel(x_ref, w1_ref, b1_ref, w2_ref, b2_ref, o_ref, *,
                           num_layers):
    """Applies `num_layers` residual layers to the resident row tile.

    x_ref : (tile_m, Hp)   lane-packed activation tile
    w*_ref: (L, Hp, Hp)    block-diagonal packed weights (y = x @ W)
    b*_ref: (L, 1, Hp)     lane-tiled biases (dtype == epilogue dtype)
    """
    mxu_dtype = w1_ref.dtype          # bf16 fast path or f32
    epi_dtype = b1_ref.dtype          # bf16 epilogue on v6e/v7x, else f32
    h = x_ref[...].astype(jnp.float32)

    def layer(l, h):
        t = jnp.dot(h.astype(mxu_dtype), w1_ref[l],
                    preferred_element_type=jnp.float32)
        t = t.astype(epi_dtype) + b1_ref[l]          # single cast of the f32 acc
        t = t * jax.lax.logistic(t)                  # swish (VPU mul + EUP logistic)
        t = jnp.dot(t.astype(mxu_dtype), w2_ref[l],
                    preferred_element_type=jnp.float32)
        t = t.astype(epi_dtype) + b2_ref[l]
        t = t * jax.lax.logistic(t)
        return h + t.astype(jnp.float32)             # residual add stays f32

    if num_layers <= 8:
        # Static unroll: weights stay resident in VMEM, h stays in vregs/VMEM.
        for l in range(num_layers):
            h = layer(l, h)
    else:
        # Long chains: rolled loop keeps code size / vreg pressure flat.
        h = jax.lax.fori_loop(0, num_layers, layer, h)

    o_ref[...] = h.astype(o_ref.dtype)


# ------------------------------- host wrapper ---------------------------------

def _pick_tile_m(m_rows, hp, num_layers, w_itemsize, b_itemsize, single_buffer):
    """Largest row tile that fits a conservative VMEM budget while keeping at
    least 4 grid steps when possible (v7x megacore sharding + pipelining)."""
    if m_rows % 8 != 0:
        # Full-extent block is always legal; only happens for tiny/odd inputs.
        return m_rows
    w_bufs = 1 if single_buffer else 2
    static = w_bufs * 2 * num_layers * (hp * hp * w_itemsize + 8 * hp * b_itemsize)
    budget = 12 << 20                    # fits v5e's 16 MiB default scoped VMEM
    avail = max(budget - static, 1 << 20)
    per_row = (2 + 2 + 3) * hp * 4       # dbl-buffered in/out + f32 working set
    cap = max(8, avail // per_row)
    divisors = [t for t in range(8, m_rows + 1, 8) if m_rows % t == 0]
    for min_steps in (4, 2, 1):
        ok = [t for t in divisors if t <= cap and m_rows // t >= min_steps]
        if ok:
            return max(ok)
    return divisors[0] if divisors else m_rows


def _residual_chain_impl(x, w1, b1, w2, b2, *, single_buffer, donate_x):
    m, h = x.shape
    num_layers, hp, _ = w1.shape
    pack = hp // h
    if pack * h != hp:
        raise ValueError("weights are not a lane-packed multiple of x's hidden dim")

    # Pad rows so the packed row count is a multiple of 8 (sublane alignment).
    row_mult = 8 * pack
    m_pad = ((m + row_mult - 1) // row_mult) * row_mult
    xp = x if m_pad == m else jnp.pad(x, ((0, m_pad - m), (0, 0)))
    m_rows = m_pad // pack
    xp = xp.reshape(m_rows, hp)          # lane-pack `pack` rows into the 128 lanes

    tile_m = _pick_tile_m(m_rows, hp, num_layers,
                          w1.dtype.itemsize, b1.dtype.itemsize, single_buffer)
    grid = (m_rows // tile_m,)

    row_spec = pl.BlockSpec((tile_m, hp), lambda i: (i, 0))
    w_shape, b_shape = (num_layers, hp, hp), (num_layers, 1, hp)
    const = lambda i: (0, 0, 0)          # weights/biases DMA'd once, resident
    if single_buffer:
        w_spec = pl.BlockSpec(w_shape, const, pipeline_mode=pl.Buffered(1))
        b_spec = pl.BlockSpec(b_shape, const, pipeline_mode=pl.Buffered(1))
    else:
        w_spec = pl.BlockSpec(w_shape, const)
        b_spec = pl.BlockSpec(b_shape, const)

    # VMEM limit sized from the real footprint (2x headroom), capped at v7x's
    # 64 MiB physical VMEM.
    w_bufs = 1 if single_buffer else 2
    static_bytes = w_bufs * 2 * num_layers * (hp * hp * w1.dtype.itemsize
                                              + 8 * hp * b1.dtype.itemsize)
    act_bytes = (2 + 2) * tile_m * hp * x.dtype.itemsize   # dbl-buffered in/out
    work_bytes = 4 * tile_m * hp * 4                       # f32 h/t working copies
    vmem_limit = int(min(64 << 20,
                         max(2 * (static_bytes + act_bytes + work_bytes) + (2 << 20),
                             16 << 20)))

    cost = pl.CostEstimate(
        flops=4 * num_layers * m_rows * hp * hp,
        transcendentals=2 * num_layers * m_rows * hp,
        bytes_accessed=(2 * m_rows * hp * x.dtype.itemsize
                        + 2 * num_layers * hp * hp * w1.dtype.itemsize
                        + 2 * num_layers * hp * b1.dtype.itemsize),
    )

    out = pl.pallas_call(
        functools.partial(_residual_chain_kernel, num_layers=num_layers),
        out_shape=jax.ShapeDtypeStruct((m_rows, hp), x.dtype),
        grid_spec=pltpu.PrefetchScalarGridSpec(
            num_scalar_prefetch=0,
            grid=grid,
            in_specs=[row_spec, w_spec, b_spec, w_spec, b_spec],
            out_specs=row_spec,
        ),
        compiler_params=pltpu.CompilerParams(
            dimension_semantics=("parallel",),   # rows shard across v7x's 2 TCs
            vmem_limit_bytes=vmem_limit,
        ),
        cost_estimate=cost,
        input_output_aliases={0: 0} if donate_x else {},
    )(xp, w1, b1, w2, b2)

    out = out.reshape(m_pad, h)
    return out[:m] if m_pad != m else out


_jit_impl = jax.jit(_residual_chain_impl,
                    static_argnames=("single_buffer", "donate_x"))

_SINGLE_BUFFER_OK = None     # resolved on first call (pl.Buffered(1) probe)


def residual_chain(x, w1, b1, w2, b2, *, donate_x=False):
    """x: (M, H).  w1/w2: (L, Hp, Hp) packed.  b1/b2: (L, 1, Hp) packed."""
    global _SINGLE_BUFFER_OK
    if _SINGLE_BUFFER_OK is None:
        try:
            out = jax.block_until_ready(
                _jit_impl(x, w1, b1, w2, b2,
                          single_buffer=True, donate_x=donate_x))
            _SINGLE_BUFFER_OK = True
            return out
        except Exception:
            _SINGLE_BUFFER_OK = False   # fall back to default double buffering
    return _jit_impl(x, w1, b1, w2, b2,
                     single_buffer=_SINGLE_BUFFER_OK, donate_x=donate_x)


# -------------------------- parameters & packing ------------------------------

def glorot_orthogonal(key, shape, scale=2.0):
    w = jax.nn.initializers.orthogonal()(key, shape, F32)
    fan = shape[-2] + shape[-1]
    return w * jnp.sqrt(scale / (fan * jnp.var(w)))


def init_residual_chain(key, num_layers, hidden):
    """Raw (unpacked) f32 params.  Weights stored pre-transposed (in, out) so
    y = x @ W; biases zero per reset_parameters (b1/b2 are distinct arrays)."""
    keys = jax.random.split(key, 2 * num_layers)
    w1 = jnp.stack([glorot_orthogonal(keys[2 * l], (hidden, hidden))
                    for l in range(num_layers)])
    w2 = jnp.stack([glorot_orthogonal(keys[2 * l + 1], (hidden, hidden))
                    for l in range(num_layers)])
    b1 = jnp.zeros((num_layers, hidden), F32)
    b2 = jnp.zeros((num_layers, hidden), F32)
    return w1, b1, w2, b2


def pack_residual_params(w1, b1, w2, b2, mxu_dtype=F32, epilogue_dtype=F32):
    """One-time (hoisted) lane packing + dtype casts.

    For H <= 128 with 128 % H == 0, p = 128 // H rows are packed per lane row:
    each weight becomes a (pH, pH) block-diagonal kron(I_p, W) and the bias is
    tiled p times along lanes, so the chain runs 128-lane-dense everywhere."""
    num_layers, hidden, _ = w1.shape
    pack = LANES // hidden if (hidden <= LANES and LANES % hidden == 0) else 1
    eye = jnp.eye(pack, dtype=F32)

    def pk_w(w):
        return jnp.stack([jnp.kron(eye, w[l]) for l in range(num_layers)]
                         ).astype(mxu_dtype)

    def pk_b(b):
        return jnp.tile(b, (1, pack)).reshape(
            num_layers, 1, pack * hidden).astype(epilogue_dtype)

    return pk_w(w1), pk_b(b1), pk_w(w2), pk_b(b2)


def residual_chain_ref(x, w1, b1, w2, b2):
    """Pure-JAX reference with the PyTorch ResidualLayer semantics (chained)."""
    h = x.astype(F32)
    for l in range(w1.shape[0]):
        t = h @ w1[l] + b1[l]
        t = t * jax.nn.sigmoid(t)
        t = t @ w2[l] + b2[l]
        t = t * jax.nn.sigmoid(t)
        h = h + t
    return h


def _supports_bf16_epilogue():
    """bf16 VPU/EUP exists on v6e/v7x; keep the f32 epilogue on v5e & older."""
    try:
        kind = jax.devices()[0].device_kind.lower()
    except Exception:
        return False
    return any(tag in kind for tag in ("v6", "v7"))


# ------------------------------------ main ------------------------------------

if __name__ == "__main__":
    HIDDEN = 32        # hidden_channels of the ResidualLayer
    ROWS = 256         # e.g. number of edges in a small DimeNet graph

    key = jax.random.PRNGKey(0)
    kx, k1, k2 = jax.random.split(key, 3)
    x = jax.random.normal(kx, (ROWS, HIDDEN), dtype=F32)

    # 1) Single ResidualLayer -- exactly the PyTorch module's forward.
    w1, b1, w2, b2 = init_residual_chain(k1, num_layers=1, hidden=HIDDEN)
    p1 = pack_residual_params(w1, b1, w2, b2)
    y = jax.block_until_ready(residual_chain(x, *p1))
    y_ref = residual_chain_ref(x, w1, b1, w2, b2)
    assert y.shape == (ROWS, HIDDEN)
    assert bool(jnp.all(jnp.isfinite(y)))
    assert bool(jnp.allclose(y, y_ref, rtol=1e-2, atol=1e-2))

    # 2) Fused chain of 4 ResidualLayers in ONE pallas_call (as used around
    #    DimeNet's skip connection: layers_before_skip + layers_after_skip).
    w1c, b1c, w2c, b2c = init_residual_chain(k2, num_layers=4, hidden=HIDDEN)
    pc = pack_residual_params(w1c, b1c, w2c, b2c)
    yc = jax.block_until_ready(residual_chain(x, *pc))
    yc_ref = residual_chain_ref(x, w1c, b1c, w2c, b2c)
    assert bool(jnp.all(jnp.isfinite(yc)))
    assert bool(jnp.allclose(yc, yc_ref, rtol=1e-2, atol=1e-2))

    # 3) bf16 MXU weights (free win on all generations); bf16 epilogue only
    #    where the VPU/EUP support it (v6e/v7x), f32 epilogue on v5e.
    epi = BF16 if _supports_bf16_epilogue() else F32
    pb = pack_residual_params(w1c, b1c, w2c, b2c,
                              mxu_dtype=BF16, epilogue_dtype=epi)
    yb = jax.block_until_ready(residual_chain(x, *pb))
    assert bool(jnp.all(jnp.isfinite(yb)))
    assert bool(jnp.allclose(yb, yc_ref, rtol=1e-1, atol=1e-1))

    # TODO(synk): expose donate_x=True (input_output_aliases={0:0}) from callers
    # that no longer need x, to drop the separate HBM output stream.
    print("KERNEL_OK")
</pallas_src>

<mosaic_0001>
module attributes {stable_mosaic.version = 11 : i64} {
  func.func @_residual_chain_kernel(%arg0: i32, %arg1: memref<16x128xf32, #tpu.memory_space<vmem>>, %arg2: memref<1x128x128xf32, #tpu.memory_space<vmem>>, %arg3: memref<1x1x128xf32, #tpu.memory_space<vmem>>, %arg4: memref<1x128x128xf32, #tpu.memory_space<vmem>>, %arg5: memref<1x1x128xf32, #tpu.memory_space<vmem>>, %arg6: memref<16x128xf32, #tpu.memory_space<vmem>>) attributes {dimension_semantics = [#tpu.dimension_semantics<parallel>], iteration_bounds = array<i64: 4>, scalar_prefetch = 0 : i64, scratch_operands = 0 : i64, tpu.core_type = #tpu.core_type<tc>, window_params = [{transform_indices = @transform_0, window_bounds = array<i64: 16, 128>}, {pipeline_mode = #tpu.pipeline_mode<synchronous>, transform_indices = @transform_1, window_bounds = array<i64: 1, 128, 128>}, {pipeline_mode = #tpu.pipeline_mode<synchronous>, transform_indices = @transform_2, window_bounds = array<i64: 1, 1, 128>}, {pipeline_mode = #tpu.pipeline_mode<synchronous>, transform_indices = @transform_3, window_bounds = array<i64: 1, 128, 128>}, {pipeline_mode = #tpu.pipeline_mode<synchronous>, transform_indices = @transform_4, window_bounds = array<i64: 1, 1, 128>}, {transform_indices = @transform_5, window_bounds = array<i64: 16, 128>}]} {
    %c0 = arith.constant 0 : index
    %c0_0 = arith.constant 0 : index
    %0 = vector.load %arg1[%c0, %c0_0] : memref<16x128xf32, #tpu.memory_space<vmem>>, vector<16x128xf32>
    %c0_1 = arith.constant 0 : index
    %c0_2 = arith.constant 0 : index
    %c0_3 = arith.constant 0 : index
    %1 = vector.load %arg2[%c0_1, %c0_2, %c0_3] : memref<1x128x128xf32, #tpu.memory_space<vmem>>, vector<1x128x128xf32>
    %2 = vector.shape_cast %1 : vector<1x128x128xf32> to vector<128x128xf32>
    %cst = arith.constant dense<0.000000e+00> : vector<16x128xf32>
    %3 = tpu.matmul %0, %2, %cst {dimension_numbers = #tpu.dot_dimension_numbers<[1], [0], [0], [1], [0, 0, 1, 1], [], []>} : vector<16x128xf32>, vector<128x128xf32>, vector<16x128xf32> -> vector<16x128xf32>
    %c0_4 = arith.constant 0 : index
    %c0_5 = arith.constant 0 : index
    %c0_6 = arith.constant 0 : index
    %4 = vector.load %arg3[%c0_4, %c0_5, %c0_6] : memref<1x1x128xf32, #tpu.memory_space<vmem>>, vector<1x1x128xf32>
    %5 = vector.shape_cast %4 : vector<1x1x128xf32> to vector<1x128xf32>
    %6 = vector.broadcast %5 : vector<1x128xf32> to vector<16x128xf32>
    %7 = arith.addf %3, %6 : vector<16x128xf32>
    %8 = arith.negf %7 : vector<16x128xf32>
    %9 = math.exp %8 : vector<16x128xf32>
    %cst_7 = arith.constant 1.000000e+00 : f32
    %10 = vector.broadcast %cst_7 : f32 to vector<16x128xf32>
    %11 = arith.addf %10, %9 : vector<16x128xf32>
    %12 = arith.divf %10, %11 : vector<16x128xf32>
    %13 = arith.mulf %7, %12 : vector<16x128xf32>
    %c0_8 = arith.constant 0 : index
    %c0_9 = arith.constant 0 : index
    %c0_10 = arith.constant 0 : index
    %14 = vector.load %arg4[%c0_8, %c0_9, %c0_10] : memref<1x128x128xf32, #tpu.memory_space<vmem>>, vector<1x128x128xf32>
    %15 = vector.shape_cast %14 : vector<1x128x128xf32> to vector<128x128xf32>
    %cst_11 = arith.constant dense<0.000000e+00> : vector<16x128xf32>
    %16 = tpu.matmul %13, %15, %cst_11 {dimension_numbers = #tpu.dot_dimension_numbers<[1], [0], [0], [1], [0, 0, 1, 1], [], []>} : vector<16x128xf32>, vector<128x128xf32>, vector<16x128xf32> -> vector<16x128xf32>
    %c0_12 = arith.constant 0 : index
    %c0_13 = arith.constant 0 : index
    %c0_14 = arith.constant 0 : index
    %17 = vector.load %arg5[%c0_12, %c0_13, %c0_14] : memref<1x1x128xf32, #tpu.memory_space<vmem>>, vector<1x1x128xf32>
    %18 = vector.shape_cast %17 : vector<1x1x128xf32> to vector<1x128xf32>
    %19 = vector.broadcast %18 : vector<1x128xf32> to vector<16x128xf32>
    %20 = arith.addf %16, %19 : vector<16x128xf32>
    %21 = arith.negf %20 : vector<16x128xf32>
    %22 = math.exp %21 : vector<16x128xf32>
    %cst_15 = arith.constant 1.000000e+00 : f32
    %23 = vector.broadcast %cst_15 : f32 to vector<16x128xf32>
    %24 = arith.addf %23, %22 : vector<16x128xf32>
    %25 = arith.divf %23, %24 : vector<16x128xf32>
    %26 = arith.mulf %20, %25 : vector<16x128xf32>
    %27 = arith.addf %0, %26 : vector<16x128xf32>
    %c0_16 = arith.constant 0 : index
    %c0_17 = arith.constant 0 : index
    %28 = vector.load %arg6[%c0_16, %c0_17] : memref<16x128xf32, #tpu.memory_space<vmem>>, vector<16x128xf32>
    tpu.vector_store %arg6[%c0_16, %c0_17], %27 {strides = array<i32>} : memref<16x128xf32, #tpu.memory_space<vmem>>, vector<16x128xf32>,
    return
  }
  func.func @transform_0(%arg0: i32) -> (i32, i32) {
    %c0_i32 = arith.constant 0 : i32
    %c0_i32_0 = arith.constant 0 : i32
    return %arg0, %c0_i32 : i32, i32
  }
  func.func @transform_1(%arg0: i32) -> (i32, i32, i32) {
    %c0_i32 = arith.constant 0 : i32
    %c0_i32_0 = arith.constant 0 : i32
    %c0_i32_1 = arith.constant 0 : i32
    %c0_i32_2 = arith.constant 0 : i32
    return %c0_i32, %c0_i32_0, %c0_i32_1 : i32, i32, i32
  }
  func.func @transform_2(%arg0: i32) -> (i32, i32, i32) {
    %c0_i32 = arith.constant 0 : i32
    %c0_i32_0 = arith.constant 0 : i32
    %c0_i32_1 = arith.constant 0 : i32
    %c0_i32_2 = arith.constant 0 : i32
    return %c0_i32, %c0_i32_0, %c0_i32_1 : i32, i32, i32
  }
  func.func @transform_3(%arg0: i32) -> (i32, i32, i32) {
    %c0_i32 = arith.constant 0 : i32
    %c0_i32_0 = arith.constant 0 : i32
    %c0_i32_1 = arith.constant 0 : i32
    %c0_i32_2 = arith.constant 0 : i32
    return %c0_i32, %c0_i32_0, %c0_i32_1 : i32, i32, i32
  }
  func.func @transform_4(%arg0: i32) -> (i32, i32, i32) {
    %c0_i32 = arith.constant 0 : i32
    %c0_i32_0 = arith.constant 0 : i32
    %c0_i32_1 = arith.constant 0 : i32
    %c0_i32_2 = arith.constant 0 : i32
    return %c0_i32, %c0_i32_0, %c0_i32_1 : i32, i32, i32
  }
  func.func @transform_5(%arg0: i32) -> (i32, i32) {
    %c0_i32 = arith.constant 0 : i32
    %c0_i32_0 = arith.constant 0 : i32
    return %arg0, %c0_i32 : i32, i32
  }
}

module attributes {stable_mosaic.version = 11 : i64} {
  func.func @_residual_chain_kernel(%arg0: i32, %arg1: memref<16x128xf32, #tpu.memory_space<vmem>>, %arg2: memref<1x128x128xf32, #tpu.memory_space<vmem>>, %arg3: memref<1x1x128xf32, #tpu.memory_space<vmem>>, %arg4: memref<1x128x128xf32, #tpu.memory_space<vmem>>, %arg5: memref<1x1x128xf32, #tpu.memory_space<vmem>>, %arg6: memref<16x128xf32, #tpu.memory_space<vmem>>) attributes {dimension_semantics = [#tpu.dimension_semantics<parallel>], iteration_bounds = array<i64: 4>, scalar_prefetch = 0 : i64, scratch_operands = 0 : i64, tpu.core_type = #tpu.core_type<tc>, window_params = [{transform_indices = @transform_0, window_bounds = array<i64: 16, 128>}, {pipeline_mode = #tpu.pipeline_mode<synchronous>, transform_indices = @transform_1, window_bounds = array<i64: 1, 128, 128>}, {pipeline_mode = #tpu.pipeline_mode<synchronous>, transform_indices = @transform_2, window_bounds = array<i64: 1, 1, 128>}, {pipeline_mode = #tpu.pipeline_mode<synchronous>, transform_indices = @transform_3, window_bounds = array<i64: 1, 128, 128>}, {pipeline_mode = #tpu.pipeline_mode<synchronous>, transform_indices = @transform_4, window_bounds = array<i64: 1, 1, 128>}, {transform_indices = @transform_5, window_bounds = array<i64: 16, 128>}]} {
    %c0 = arith.constant 0 : index
    %c0_0 = arith.constant 0 : index
    %0 = vector.load %arg1[%c0, %c0_0] : memref<16x128xf32, #tpu.memory_space<vmem>>, vector<16x128xf32>
    %c0_1 = arith.constant 0 : index
    %c0_2 = arith.constant 0 : index
    %c0_3 = arith.constant 0 : index
    %1 = vector.load %arg2[%c0_1, %c0_2, %c0_3] : memref<1x128x128xf32, #tpu.memory_space<vmem>>, vector<1x128x128xf32>
    %2 = vector.shape_cast %1 : vector<1x128x128xf32> to vector<128x128xf32>
    %cst = arith.constant dense<0.000000e+00> : vector<16x128xf32>
    %3 = tpu.matmul %0, %2, %cst {dimension_numbers = #tpu.dot_dimension_numbers<[1], [0], [0], [1], [0, 0, 1, 1], [], []>} : vector<16x128xf32>, vector<128x128xf32>, vector<16x128xf32> -> vector<16x128xf32>
    %c0_4 = arith.constant 0 : index
    %c0_5 = arith.constant 0 : index
    %c0_6 = arith.constant 0 : index
    %4 = vector.load %arg3[%c0_4, %c0_5, %c0_6] : memref<1x1x128xf32, #tpu.memory_space<vmem>>, vector<1x1x128xf32>
    %5 = vector.shape_cast %4 : vector<1x1x128xf32> to vector<1x128xf32>
    %6 = vector.broadcast %5 : vector<1x128xf32> to vector<16x128xf32>
    %7 = arith.addf %3, %6 : vector<16x128xf32>
    %8 = arith.negf %7 : vector<16x128xf32>
    %9 = math.exp %8 : vector<16x128xf32>
    %cst_7 = arith.constant 1.000000e+00 : f32
    %10 = vector.broadcast %cst_7 : f32 to vector<16x128xf32>
    %11 = arith.addf %10, %9 : vector<16x128xf32>
    %12 = arith.divf %10, %11 : vector<16x128xf32>
    %13 = arith.mulf %7, %12 : vector<16x128xf32>
    %c0_8 = arith.constant 0 : index
    %c0_9 = arith.constant 0 : index
    %c0_10 = arith.constant 0 : index
    %14 = vector.load %arg4[%c0_8, %c0_9, %c0_10] : memref<1x128x128xf32, #tpu.memory_space<vmem>>, vector<1x128x128xf32>
    %15 = vector.shape_cast %14 : vector<1x128x128xf32> to vector<128x128xf32>
    %cst_11 = arith.constant dense<0.000000e+00> : vector<16x128xf32>
    %16 = tpu.matmul %13, %15, %cst_11 {dimension_numbers = #tpu.dot_dimension_numbers<[1], [0], [0], [1], [0, 0, 1, 1], [], []>} : vector<16x128xf32>, vector<128x128xf32>, vector<16x128xf32> -> vector<16x128xf32>
    %c0_12 = arith.constant 0 : index
    %c0_13 = arith.constant 0 : index
    %c0_14 = arith.constant 0 : index
    %17 = vector.load %arg5[%c0_12, %c0_13, %c0_14] : memref<1x1x128xf32, #tpu.memory_space<vmem>>, vector<1x1x128xf32>
    %18 = vector.shape_cast %17 : vector<1x1x128xf32> to vector<1x128xf32>
    %19 = vector.broadcast %18 : vector<1x128xf32> to vector<16x128xf32>
    %20 = arith.addf %16, %19 : vector<16x128xf32>
    %21 = arith.negf %20 : vector<16x128xf32>
    %22 = math.exp %21 : vector<16x128xf32>
    %cst_15 = arith.constant 1.000000e+00 : f32
    %23 = vector.broadcast %cst_15 : f32 to vector<16x128xf32>
    %24 = arith.addf %23, %22 : vector<16x128xf32>
    %25 = arith.divf %23, %24 : vector<16x128xf32>
    %26 = arith.mulf %20, %25 : vector<16x128xf32>
    %27 = arith.addf %0, %26 : vector<16x128xf32>
    %c0_16 = arith.constant 0 : index
    %c0_17 = arith.constant 0 : index
    %28 = vector.load %arg6[%c0_16, %c0_17] : memref<16x128xf32, #tpu.memory_space<vmem>>, vector<16x128xf32>
    tpu.vector_store %arg6[%c0_16, %c0_17], %27 {strides = array<i32>} : memref<16x128xf32, #tpu.memory_space<vmem>>, vector<16x128xf32>,
    return
  }
  func.func @transform_0(%arg0: i32) -> (i32, i32) {
    %c0_i32 = arith.constant 0 : i32
    %c0_i32_0 = arith.constant 0 : i32
    return %arg0, %c0_i32 : i32, i32
  }
  func.func @transform_1(%arg0: i32) -> (i32, i32, i32) {
    %c0_i32 = arith.constant 0 : i32
    %c0_i32_0 = arith.constant 0 : i32
    %c0_i32_1 = arith.constant 0 : i32
    %c0_i32_2 = arith.constant 0 : i32
    return %c0_i32, %c0_i32_0, %c0_i32_1 : i32, i32, i32
  }
  func.func @transform_2(%arg0: i32) -> (i32, i32, i32) {
    %c0_i32 = arith.constant 0 : i32
    %c0_i32_0 = arith.constant 0 : i32
    %c0_i32_1 = arith.constant 0 : i32
    %c0_i32_2 = arith.constant 0 : i32
    return %c0_i32, %c0_i32_0, %c0_i32_1 : i32, i32, i32
  }
  func.func @transform_3(%arg0: i32) -> (i32, i32, i32) {
    %c0_i32 = arith.constant 0 : i32
    %c0_i32_0 = arith.constant 0 : i32
    %c0_i32_1 = arith.constant 0 : i32
    %c0_i32_2 = arith.constant 0 : i32
    return %c0_i32, %c0_i32_0, %c0_i32_1 : i32, i32, i32
  }
  func.func @transform_4(%arg0: i32) -> (i32, i32, i32) {
    %c0_i32 = arith.constant 0 : i32
    %c0_i32_0 = arith.constant 0 : i32
    %c0_i32_1 = arith.constant 0 : i32
    %c0_i32_2 = arith.constant 0 : i32
    return %c0_i32, %c0_i32_0, %c0_i32_1 : i32, i32, i32
  }
  func.func @transform_5(%arg0: i32) -> (i32, i32) {
    %c0_i32 = arith.constant 0 : i32
    %c0_i32_0 = arith.constant 0 : i32
    return %arg0, %c0_i32 : i32, i32
  }
}

</mosaic_0001>

<bundles_post_ra>
// kernel: _residual_chain_impl.1
= control target key start
LH: loop header
LB: loop body
LE: loop exit
PB: predicated region body
PF: predicated region fallthrough
CT: control target
= control target key end

     0   :  { %s763_s18 = smov 0   ;;  %s897_s0 = inlined_call_operand.vmem [shape: f32[64,128], index: 0, kind: input, shape index: {}]   ;;  %s898_s1 = inlined_call_operand.vmem [shape: f32[1,128,128], index: 1, kind: input, shape index: {}]   ;;  %s899_s2 = inlined_call_operand.vmem [shape: f32[1,1,128], index: 2, kind: input, shape index: {}]   ;;  %s900_s3 = inlined_call_operand.vmem [shape: f32[1,128,128], index: 3, kind: input, shape index: {}]   ;;  %s901_s4 = inlined_call_operand.vmem [shape: f32[1,1,128], index: 4, kind: input, shape index: {}]   ;;  %s902_s5 = inlined_call_operand.vmem [shape: f32[64,128], index: 5, kind: output, shape index: {}]  }
   0x1 LB: > { %s514_s19 = sadd.s32 4294967295, %s731_s18   ;;  %p518_p0 = scmp.ge.s32.totalorder %s731_s18, 1  ;;  %s731_s18 = sphi %s763_s18, %s15_s18  }
   0x2   : > { %p188_p1 = scmp.lt.s32.totalorder %s731_s18, 5 }
   0x4   : > { %p189_p2 = pnand %p518_p0, %p188_p1 }
   0x5   : > { %v230_v0 = vld [vmem:[%s898_s1] sm:$0xff] (!%p189_p2)  ;;  %v231_v1 = vld [vmem:[%s898_s1 + $0x8] sm:$0xff] (!%p189_p2)  ;;  %v232_v2 = vld [vmem:[%s898_s1 + $0x10] sm:$0xff] (!%p189_p2)  ;;  %s519_s26 = sshll.u32 (!%p189_p2), %s514_s19, 1 }
   0x6   : > { %192 = sbr.rel (%p189_p2) target bundleno = 530 (0x212), region = 40  ;;  %v637_v3 = vpack.c.bf16 (!%p189_p2), %v231_v1, %v230_v0  ;;  %v233_v4 = vld [vmem:[%s898_s1 + $0x18] sm:$0xff] (!%p189_p2)  ;;  %p217_p3 = scmp.lt.s32.totalorder (!%p189_p2), %s519_s26, 7  ;;  %v234_v6 = vld [vmem:[%s898_s1 + $0x20] sm:$0xff] (!%p189_p2)  ;;  %v235_v7 = vld [vmem:[%s898_s1 + $0x28] sm:$0xff] (!%p189_p2) }
   0x7   : > { %v641_v5 = vpack.c.bf16 (!%p189_p2), %v233_v4, %v232_v2  ;;  %v645_v8 = vpack.c.bf16 (!%p189_p2), %v235_v7, %v234_v6  ;;  %v236_v9 = vld [vmem:[%s898_s1 + $0x30] sm:$0xff] (!%p189_p2)  ;;  %v237_v10 = vld [vmem:[%s898_s1 + $0x38] sm:$0xff] (!%p189_p2)  ;;  %v238_v13 = vld [vmem:[%s898_s1 + $0x40] sm:$0xff] (!%p189_p2) }
   0x8   : > { %638 = vmatprep.subr.bf16.mxu0 (!%p189_p2), %v637_v3  ;;  %v649_v12 = vpack.c.bf16 (!%p189_p2), %v237_v10, %v236_v9  ;;  %v239_v14 = vld [vmem:[%s898_s1 + $0x48] sm:$0xff] (!%p189_p2)  ;;  %v240_v16 = vld [vmem:[%s898_s1 + $0x50] sm:$0xff] (!%p189_p2)  ;;  %v241_v17 = vld [vmem:[%s898_s1 + $0x58] sm:$0xff] (!%p189_p2) }
   0x9   : > { %640 = vmatpush3.bf16.msra.mxu0 (!%p189_p2), %v637_v3  ;;  %v653_v15 = vpack.c.bf16 (!%p189_p2), %v239_v14, %v238_v13  ;;  %v657_v18 = vpack.c.bf16 (!%p189_p2), %v241_v17, %v240_v16  ;;  %v242_v19 = vld [vmem:[%s898_s1 + $0x60] sm:$0xff] (!%p189_p2)  ;;  %v243_v20 = vld [vmem:[%s898_s1 + $0x68] sm:$0xff] (!%p189_p2)  ;;  %v244_v22 = vld [vmem:[%s898_s1 + $0x70] sm:$0xff] (!%p189_p2) }
   0xa   : > { %642 = vmatprep.subr.bf16.mxu0 (!%p189_p2), %v641_v5  ;;  %v661_v21 = vpack.c.bf16 (!%p189_p2), %v243_v20, %v242_v19  ;;  %v245_v23 = vld [vmem:[%s898_s1 + $0x78] sm:$0xff] (!%p189_p2)  ;;  %v342_v26 = vld [vmem:[%s900_s3] sm:$0xff] (!%p189_p2)  ;;  %v343_v27 = vld [vmem:[%s900_s3 + $0x8] sm:$0xff] (!%p189_p2) }
   0xb   : > { %v665_v24 = vpack.c.bf16 (!%p189_p2), %v245_v23, %v244_v22  ;;  %v669_v28 = vpack.c.bf16 (!%p189_p2), %v343_v27, %v342_v26  ;;  %v344_v29 = vld [vmem:[%s900_s3 + $0x10] sm:$0xff] (!%p189_p2)  ;;  %v345_v30 = vld [vmem:[%s900_s3 + $0x18] sm:$0xff] (!%p189_p2)  ;;  %v346_v32 = vld [vmem:[%s900_s3 + $0x20] sm:$0xff] (!%p189_p2) }
   0xc   : > { %v673_v31 = vpack.c.bf16 (!%p189_p2), %v345_v30, %v344_v29  ;;  %v347_v33 = vld [vmem:[%s900_s3 + $0x28] sm:$0xff] (!%p189_p2)  ;;  %v348_v35 = vld [vmem:[%s900_s3 + $0x30] sm:$0xff] (!%p189_p2)  ;;  %v349_v36 = vld [vmem:[%s900_s3 + $0x38] sm:$0xff] (!%p189_p2) }
   0xd   : > { %s904_s26 = smov (!%p217_p3, %s519_s26), 7  ;;  %644 = vmatpush3.bf16.msra.mxu0 %v641_v5  ;;  %670 = vmatprep.subr.bf16.mxu1 %v669_v28  ;;  %v677_v34 = vpack.c.bf16 %v347_v33, %v346_v32  ;;  %v681_v37 = vpack.c.bf16 %v349_v36, %v348_v35  ;;  %v350_v38 = vld [vmem:[%s900_s3 + $0x40] sm:$0xff]  ;;  %v351_v39 = vld [vmem:[%s900_s3 + $0x48] sm:$0xff]  ;;  %v352_v41 = vld [vmem:[%s900_s3 + $0x50] sm:$0xff] }
   0xe   : > { %s520_s8 = sshll.u32 %s904_s26, 3  ;;  %646 = vmatprep.subr.bf16.mxu0 %v645_v8  ;;  %672 = vmatpush3.bf16.msra.mxu1 %v669_v28  ;;  %v685_v40 = vpack.c.bf16 %v351_v39, %v350_v38  ;;  %v353_v42 = vld [vmem:[%s900_s3 + $0x58] sm:$0xff]  ;;  %v354_v44 = vld [vmem:[%s900_s3 + $0x60] sm:$0xff]  ;;  %v355_v45 = vld [vmem:[%s900_s3 + $0x68] sm:$0xff] }
   0xf   : > { %s220_s15 = scalar_lea.vmem %s897_s0, %s520_s8  ;;  %674 = vmatprep.subr.bf16.mxu1 %v673_v31  ;;  %v689_v43 = vpack.c.bf16 %v353_v42, %v352_v41  ;;  %v693_v46 = vpack.c.bf16 %v355_v45, %v354_v44  ;;  %v356_v47 = vld [vmem:[%s900_s3 + $0x70] sm:$0xff]  ;;  %v357_v48 = vld [vmem:[%s900_s3 + $0x78] sm:$0xff]  ;;  %v523_v50 = vld [vmem:[%s899_s2] ss:$0 sm:$0xff]  ;;  %s226_s28 = scalar_lea.vmem %s902_s5, %s520_s8 }
  0x10   : > { %v803_v11 = vld [vmem:[%s220_s15] sm:$0xff]  ;;  %v830_v25 = vld [vmem:[%s220_s15 + $0x8] sm:$0xff]  ;;  %v697_v49 = vpack.c.bf16 %v357_v48, %v356_v47 }
  0x11   : > { %599 = vmatprep.mubr.f32.mxu0 %v803_v11  ;;  %648 = vmatpush3.bf16.msra.mxu0 %v645_v8  ;;  %v526_v1 = vld [vmem:[%s901_s4] ss:$0 sm:$0xff] }
  0x12   : > { %650 = vmatprep.subr.bf16.mxu0 %v649_v12  ;;  %676 = vmatpush3.bf16.msra.mxu1 %v673_v31 }
  0x13   : > { %678 = vmatprep.subr.bf16.mxu1 %v677_v34 }
  0x15   : > { %652 = vmatpush3.bf16.msra.mxu0 %v649_v12 }
  0x16   : > { %654 = vmatprep.subr.bf16.mxu0 %v653_v15  ;;  %680 = vmatpush3.bf16.msra.mxu1 %v677_v34 }
  0x17   : > { %682 = vmatprep.subr.bf16.mxu1 %v681_v37 }
  0x19   : > { %656 = vmatpush3.bf16.msra.mxu0 %v653_v15 }
  0x1a   : > { %658 = vmatprep.subr.bf16.mxu0 %v657_v18  ;;  %684 = vmatpush3.bf16.msra.mxu1 %v681_v37 }
  0x1b   : > { %686 = vmatprep.subr.bf16.mxu1 %v685_v40 }
  0x1d   : > { %660 = vmatpush3.bf16.msra.mxu0 %v657_v18 }
  0x1e   : > { %662 = vmatprep.subr.bf16.mxu0 %v661_v21  ;;  %688 = vmatpush3.bf16.msra.mxu1 %v685_v40 }
  0x1f   : > { %690 = vmatprep.subr.bf16.mxu1 %v689_v43 }
  0x21   : > { %664 = vmatpush3.bf16.msra.mxu0 %v661_v21 }
  0x22   : > { %666 = vmatprep.subr.bf16.mxu0 %v665_v24  ;;  %692 = vmatpush3.bf16.msra.mxu1 %v689_v43 }
  0x23   : > { %694 = vmatprep.subr.bf16.mxu1 %v693_v46 }
  0x25   : > { %668 = vmatpush3.bf16.msra.mxu0 %v665_v24 }
  0x26   : > { %696 = vmatpush3.bf16.msra.mxu1 %v693_v46 }
  0x27   : > { %698 = vmatprep.subr.bf16.mxu1 %v697_v49 }
  0x28   : > { %600 = vmatmul.mubr.f32.vlgmr.msra.gmra.mrb[0].mxu0 %v830_v25 }
  0x2a   : > { %700 = vmatpush3.bf16.msra.mxu1 %v697_v49 }
  0xfb   : > { %v601_v51 = vpop.f32.mrb[0].mxu0 }
  0xfc   : > { %v325_v52 = vadd.f32 %v601_v51, %v523_v50  ;;  %v319_v53 = vpop.f32.mrb[1].mxu0 }
  0xfd   : > { %v320_v54 = vadd.f32 %v523_v50, %v319_v53 }
  0xfe   : > { %v525_v55 = vmul.f32 -1.442695, %v325_v52 }
  0xff   : > { %v524_v56 = vmul.f32 -1.442695, %v320_v54 }
 0x100   : > { %709 = vpow2.f32 %v525_v55 }
 0x101   : > { %711 = vpow2.f32 %v524_v56 }
 0x10a   : > { %v710_v57 = vpop.eup %709 }
 0x10b   : > { %v712_v58 = vpop.eup %711  ;;  %v335_v59 = vadd.f32 1.0, %v710_v57 }
 0x10c   : > { %v334_v60 = vadd.f32 1.0, %v712_v58 }
 0x10d   : > { %713 = vrcp.f32 %v335_v59 }
 0x10e   : > { %715 = vrcp.f32 %v334_v60 }
 0x117   : > { %v714_v61 = vpop.eup %713 }
 0x118   : > { %v716_v62 = vpop.eup %715  ;;  %v341_v0 = vmul.f32 %v714_v61, %v325_v52 }
 0x119   : > { %v340_v63 = vmul.f32 %v716_v62, %v320_v54 }
 0x11b   : > { %634 = vmatprep.mubr.f32.mxu1 %v340_v63 }
 0x11c   : > { %635 = vmatmul.mubr.f32.vlgmr.msra.gmra.mrb[0].mxu1 %v341_v0 }
 0x1ef   : > { %v636_v2 = vpop.f32.mrb[0].mxu1 }
 0x1f0   : > { %v437_v3 = vadd.f32 %v636_v2, %v526_v1  ;;  %v431_v4 = vpop.f32.mrb[1].mxu1 }
 0x1f1   : > { %v432_v5 = vadd.f32 %v526_v1, %v431_v4 }
 0x1f2   : > { %v528_v6 = vmul.f32 -1.442695, %v437_v3 }
 0x1f3   : > { %v527_v7 = vmul.f32 -1.442695, %v432_v5 }
 0x1f4   : > { %717 = vpow2.f32 %v528_v6 }
 0x1f5   : > { %719 = vpow2.f32 %v527_v7 }
 0x1fe   : > { %v718_v8 = vpop.eup %717 }
 0x1ff   : > { %v720_v9 = vpop.eup %719  ;;  %v447_v10 = vadd.f32 1.0, %v718_v8 }
 0x200   : > { %v446_v12 = vadd.f32 1.0, %v720_v9 }
 0x201   : > { %721 = vrcp.f32 %v447_v10 }
 0x202   : > { %723 = vrcp.f32 %v446_v12 }
 0x20b   : > { %v722_v13 = vpop.eup %721 }
 0x20c   : > { %v724_v14 = vpop.eup %723  ;;  %v453_v15 = vmul.f32 %v722_v13, %v437_v3 }
 0x20d   : > { %v452_v16 = vmul.f32 %v724_v14, %v432_v5 }
 0x20e   : > { %v455_v18 = vadd.f32 %v453_v15, %v830_v25 }
 0x20f   : > { %v454_v17 = vadd.f32 %v452_v16, %v803_v11 }
 0x210   : > { %457 = vst [vmem:[%s226_s28 + $0x8] sm:$0xff] %v455_v18 }
 0x211   : > { %456 = vst [vmem:[%s226_s28] sm:$0xff] %v454_v17 }
 0x212 PF: > { %s15_s18 = sadd.s32 1, %s731_s18  }
 0x213   : > { %p12_p4 = scmp.ge.s32.totalorder %s15_s18, 6  }
 0x215   :  { %14 = sbr.rel (!%p12_p4) target bundleno = 1 (0x1), region = 70 }

// kernel: _residual_chain_impl.1
= control target key start
LH: loop header
LB: loop body
LE: loop exit
PB: predicated region body
PF: predicated region fallthrough
CT: control target
= control target key end

     0   :  { %s763_s18 = smov 0   ;;  %s897_s0 = inlined_call_operand.vmem [shape: f32[64,128], index: 0, kind: input, shape index: {}]   ;;  %s898_s1 = inlined_call_operand.vmem [shape: f32[1,128,128], index: 1, kind: input, shape index: {}]   ;;  %s899_s2 = inlined_call_operand.vmem [shape: f32[1,1,128], index: 2, kind: input, shape index: {}]   ;;  %s900_s3 = inlined_call_operand.vmem [shape: f32[1,128,128], index: 3, kind: input, shape index: {}]   ;;  %s901_s4 = inlined_call_operand.vmem [shape: f32[1,1,128], index: 4, kind: input, shape index: {}]   ;;  %s902_s5 = inlined_call_operand.vmem [shape: f32[64,128], index: 5, kind: output, shape index: {}]  }
   0x1 LB: > { %s514_s19 = sadd.s32 4294967295, %s731_s18   ;;  %p518_p0 = scmp.ge.s32.totalorder %s731_s18, 1  ;;  %s731_s18 = sphi %s763_s18, %s15_s18  }
   0x2   : > { %p188_p1 = scmp.lt.s32.totalorder %s731_s18, 5 }
   0x4   : > { %p189_p2 = pnand %p518_p0, %p188_p1 }
   0x5   : > { %v230_v0 = vld [vmem:[%s898_s1] sm:$0xff] (!%p189_p2)  ;;  %v231_v1 = vld [vmem:[%s898_s1 + $0x8] sm:$0xff] (!%p189_p2)  ;;  %v232_v2 = vld [vmem:[%s898_s1 + $0x10] sm:$0xff] (!%p189_p2)  ;;  %s519_s26 = sshll.u32 (!%p189_p2), %s514_s19, 1 }
   0x6   : > { %192 = sbr.rel (%p189_p2) target bundleno = 530 (0x212), region = 40  ;;  %v637_v3 = vpack.c.bf16 (!%p189_p2), %v231_v1, %v230_v0  ;;  %v233_v4 = vld [vmem:[%s898_s1 + $0x18] sm:$0xff] (!%p189_p2)  ;;  %p217_p3 = scmp.lt.s32.totalorder (!%p189_p2), %s519_s26, 7  ;;  %v234_v6 = vld [vmem:[%s898_s1 + $0x20] sm:$0xff] (!%p189_p2)  ;;  %v235_v7 = vld [vmem:[%s898_s1 + $0x28] sm:$0xff] (!%p189_p2) }
   0x7   : > { %v641_v5 = vpack.c.bf16 (!%p189_p2), %v233_v4, %v232_v2  ;;  %v645_v8 = vpack.c.bf16 (!%p189_p2), %v235_v7, %v234_v6  ;;  %v236_v9 = vld [vmem:[%s898_s1 + $0x30] sm:$0xff] (!%p189_p2)  ;;  %v237_v10 = vld [vmem:[%s898_s1 + $0x38] sm:$0xff] (!%p189_p2)  ;;  %v238_v13 = vld [vmem:[%s898_s1 + $0x40] sm:$0xff] (!%p189_p2) }
   0x8   : > { %638 = vmatprep.subr.bf16.mxu0 (!%p189_p2), %v637_v3  ;;  %v649_v12 = vpack.c.bf16 (!%p189_p2), %v237_v10, %v236_v9  ;;  %v239_v14 = vld [vmem:[%s898_s1 + $0x48] sm:$0xff] (!%p189_p2)  ;;  %v240_v16 = vld [vmem:[%s898_s1 + $0x50] sm:$0xff] (!%p189_p2)  ;;  %v241_v17 = vld [vmem:[%s898_s1 + $0x58] sm:$0xff] (!%p189_p2) }
   0x9   : > { %640 = vmatpush3.bf16.msra.mxu0 (!%p189_p2), %v637_v3  ;;  %v653_v15 = vpack.c.bf16 (!%p189_p2), %v239_v14, %v238_v13  ;;  %v657_v18 = vpack.c.bf16 (!%p189_p2), %v241_v17, %v240_v16  ;;  %v242_v19 = vld [vmem:[%s898_s1 + $0x60] sm:$0xff] (!%p189_p2)  ;;  %v243_v20 = vld [vmem:[%s898_s1 + $0x68] sm:$0xff] (!%p189_p2)  ;;  %v244_v22 = vld [vmem:[%s898_s1 + $0x70] sm:$0xff] (!%p189_p2) }
   0xa   : > { %642 = vmatprep.subr.bf16.mxu0 (!%p189_p2), %v641_v5  ;;  %v661_v21 = vpack.c.bf16 (!%p189_p2), %v243_v20, %v242_v19  ;;  %v245_v23 = vld [vmem:[%s898_s1 + $0x78] sm:$0xff] (!%p189_p2)  ;;  %v342_v26 = vld [vmem:[%s900_s3] sm:$0xff] (!%p189_p2)  ;;  %v343_v27 = vld [vmem:[%s900_s3 + $0x8] sm:$0xff] (!%p189_p2) }
   0xb   : > { %v665_v24 = vpack.c.bf16 (!%p189_p2), %v245_v23, %v244_v22  ;;  %v669_v28 = vpack.c.bf16 (!%p189_p2), %v343_v27, %v342_v26  ;;  %v344_v29 = vld [vmem:[%s900_s3 + $0x10] sm:$0xff] (!%p189_p2)  ;;  %v345_v30 = vld [vmem:[%s900_s3 + $0x18] sm:$0xff] (!%p189_p2)  ;;  %v346_v32 = vld [vmem:[%s900_s3 + $0x20] sm:$0xff] (!%p189_p2) }
   0xc   : > { %v673_v31 = vpack.c.bf16 (!%p189_p2), %v345_v30, %v344_v29  ;;  %v347_v33 = vld [vmem:[%s900_s3 + $0x28] sm:$0xff] (!%p189_p2)  ;;  %v348_v35 = vld [vmem:[%s900_s3 + $0x30] sm:$0xff] (!%p189_p2)  ;;  %v349_v36 = vld [vmem:[%s900_s3 + $0x38] sm:$0xff] (!%p189_p2) }
   0xd   : > { %s904_s26 = smov (!%p217_p3, %s519_s26), 7  ;;  %644 = vmatpush3.bf16.msra.mxu0 %v641_v5  ;;  %670 = vmatprep.subr.bf16.mxu1 %v669_v28  ;;  %v677_v34 = vpack.c.bf16 %v347_v33, %v346_v32  ;;  %v681_v37 = vpack.c.bf16 %v349_v36, %v348_v35  ;;  %v350_v38 = vld [vmem:[%s900_s3 + $0x40] sm:$0xff]  ;;  %v351_v39 = vld [vmem:[%s900_s3 + $0x48] sm:$0xff]  ;;  %v352_v41 = vld [vmem:[%s900_s3 + $0x50] sm:$0xff] }
   0xe   : > { %s520_s8 = sshll.u32 %s904_s26, 3  ;;  %646 = vmatprep.subr.bf16.mxu0 %v645_v8  ;;  %672 = vmatpush3.bf16.msra.mxu1 %v669_v28  ;;  %v685_v40 = vpack.c.bf16 %v351_v39, %v350_v38  ;;  %v353_v42 = vld [vmem:[%s900_s3 + $0x58] sm:$0xff]  ;;  %v354_v44 = vld [vmem:[%s900_s3 + $0x60] sm:$0xff]  ;;  %v355_v45 = vld [vmem:[%s900_s3 + $0x68] sm:$0xff] }
   0xf   : > { %s220_s15 = scalar_lea.vmem %s897_s0, %s520_s8  ;;  %674 = vmatprep.subr.bf16.mxu1 %v673_v31  ;;  %v689_v43 = vpack.c.bf16 %v353_v42, %v352_v41  ;;  %v693_v46 = vpack.c.bf16 %v355_v45, %v354_v44  ;;  %v356_v47 = vld [vmem:[%s900_s3 + $0x70] sm:$0xff]  ;;  %v357_v48 = vld [vmem:[%s900_s3 + $0x78] sm:$0xff]  ;;  %v523_v50 = vld [vmem:[%s899_s2] ss:$0 sm:$0xff]  ;;  %s226_s28 = scalar_lea.vmem %s902_s5, %s520_s8 }
  0x10   : > { %v803_v11 = vld [vmem:[%s220_s15] sm:$0xff]  ;;  %v830_v25 = vld [vmem:[%s220_s15 + $0x8] sm:$0xff]  ;;  %v697_v49 = vpack.c.bf16 %v357_v48, %v356_v47 }
  0x11   : > { %599 = vmatprep.mubr.f32.mxu0 %v803_v11  ;;  %648 = vmatpush3.bf16.msra.mxu0 %v645_v8  ;;  %v526_v1 = vld [vmem:[%s901_s4] ss:$0 sm:$0xff] }
  0x12   : > { %650 = vmatprep.subr.bf16.mxu0 %v649_v12  ;;  %676 = vmatpush3.bf16.msra.mxu1 %v673_v31 }
  0x13   : > { %678 = vmatprep.subr.bf16.mxu1 %v677_v34 }
  0x15   : > { %652 = vmatpush3.bf16.msra.mxu0 %v649_v12 }
  0x16   : > { %654 = vmatprep.subr.bf16.mxu0 %v653_v15  ;;  %680 = vmatpush3.bf16.msra.mxu1 %v677_v34 }
  0x17   : > { %682 = vmatprep.subr.bf16.mxu1 %v681_v37 }
  0x19   : > { %656 = vmatpush3.bf16.msra.mxu0 %v653_v15 }
  0x1a   : > { %658 = vmatprep.subr.bf16.mxu0 %v657_v18  ;;  %684 = vmatpush3.bf16.msra.mxu1 %v681_v37 }
  0x1b   : > { %686 = vmatprep.subr.bf16.mxu1 %v685_v40 }
  0x1d   : > { %660 = vmatpush3.bf16.msra.mxu0 %v657_v18 }
  0x1e   : > { %662 = vmatprep.subr.bf16.mxu0 %v661_v21  ;;  %688 = vmatpush3.bf16.msra.mxu1 %v685_v40 }
  0x1f   : > { %690 = vmatprep.subr.bf16.mxu1 %v689_v43 }
  0x21   : > { %664 = vmatpush3.bf16.msra.mxu0 %v661_v21 }
  0x22   : > { %666 = vmatprep.subr.bf16.mxu0 %v665_v24  ;;  %692 = vmatpush3.bf16.msra.mxu1 %v689_v43 }
  0x23   : > { %694 = vmatprep.subr.bf16.mxu1 %v693_v46 }
  0x25   : > { %668 = vmatpush3.bf16.msra.mxu0 %v665_v24 }
  0x26   : > { %696 = vmatpush3.bf16.msra.mxu1 %v693_v46 }
  0x27   : > { %698 = vmatprep.subr.bf16.mxu1 %v697_v49 }
  0x28   : > { %600 = vmatmul.mubr.f32.vlgmr.msra.gmra.mrb[0].mxu0 %v830_v25 }
  0x2a   : > { %700 = vmatpush3.bf16.msra.mxu1 %v697_v49 }
  0xfb   : > { %v601_v51 = vpop.f32.mrb[0].mxu0 }
  0xfc   : > { %v325_v52 = vadd.f32 %v601_v51, %v523_v50  ;;  %v319_v53 = vpop.f32.mrb[1].mxu0 }
  0xfd   : > { %v320_v54 = vadd.f32 %v523_v50, %v319_v53 }
  0xfe   : > { %v525_v55 = vmul.f32 -1.442695, %v325_v52 }
  0xff   : > { %v524_v56 = vmul.f32 -1.442695, %v320_v54 }
 0x100   : > { %709 = vpow2.f32 %v525_v55 }
 0x101   : > { %711 = vpow2.f32 %v524_v56 }
 0x10a   : > { %v710_v57 = vpop.eup %709 }
 0x10b   : > { %v712_v58 = vpop.eup %711  ;;  %v335_v59 = vadd.f32 1.0, %v710_v57 }
 0x10c   : > { %v334_v60 = vadd.f32 1.0, %v712_v58 }
 0x10d   : > { %713 = vrcp.f32 %v335_v59 }
 0x10e   : > { %715 = vrcp.f32 %v334_v60 }
 0x117   : > { %v714_v61 = vpop.eup %713 }
 0x118   : > { %v716_v62 = vpop.eup %715  ;;  %v341_v0 = vmul.f32 %v714_v61, %v325_v52 }
 0x119   : > { %v340_v63 = vmul.f32 %v716_v62, %v320_v54 }
 0x11b   : > { %634 = vmatprep.mubr.f32.mxu1 %v340_v63 }
 0x11c   : > { %635 = vmatmul.mubr.f32.vlgmr.msra.gmra.mrb[0].mxu1 %v341_v0 }
 0x1ef   : > { %v636_v2 = vpop.f32.mrb[0].mxu1 }
 0x1f0   : > { %v437_v3 = vadd.f32 %v636_v2, %v526_v1  ;;  %v431_v4 = vpop.f32.mrb[1].mxu1 }
 0x1f1   : > { %v432_v5 = vadd.f32 %v526_v1, %v431_v4 }
 0x1f2   : > { %v528_v6 = vmul.f32 -1.442695, %v437_v3 }
 0x1f3   : > { %v527_v7 = vmul.f32 -1.442695, %v432_v5 }
 0x1f4   : > { %717 = vpow2.f32 %v528_v6 }
 0x1f5   : > { %719 = vpow2.f32 %v527_v7 }
 0x1fe   : > { %v718_v8 = vpop.eup %717 }
 0x1ff   : > { %v720_v9 = vpop.eup %719  ;;  %v447_v10 = vadd.f32 1.0, %v718_v8 }
 0x200   : > { %v446_v12 = vadd.f32 1.0, %v720_v9 }
 0x201   : > { %721 = vrcp.f32 %v447_v10 }
 0x202   : > { %723 = vrcp.f32 %v446_v12 }
 0x20b   : > { %v722_v13 = vpop.eup %721 }
 0x20c   : > { %v724_v14 = vpop.eup %723  ;;  %v453_v15 = vmul.f32 %v722_v13, %v437_v3 }
 0x20d   : > { %v452_v16 = vmul.f32 %v724_v14, %v432_v5 }
 0x20e   : > { %v455_v18 = vadd.f32 %v453_v15, %v830_v25 }
 0x20f   : > { %v454_v17 = vadd.f32 %v452_v16, %v803_v11 }
 0x210   : > { %457 = vst [vmem:[%s226_s28 + $0x8] sm:$0xff] %v455_v18 }
 0x211   : > { %456 = vst [vmem:[%s226_s28] sm:$0xff] %v454_v17 }
 0x212 PF: > { %s15_s18 = sadd.s32 1, %s731_s18  }
 0x213   : > { %p12_p4 = scmp.ge.s32.totalorder %s15_s18, 6  }
 0x215   :  { %14 = sbr.rel (!%p12_p4) target bundleno = 1 (0x1), region = 70 }

</bundles_post_ra>
